<compile_context>
chip_gen: v5e
topology: v5e:2x2
jax: 0.10.0
libtpu: 0.0.40
codegen_flags: <defaults>
</compile_context>

<pallas_src>
import functools

import jax
import jax.numpy as jnp
import numpy as np
from jax.experimental import pallas as pl
from jax.experimental.pallas import tpu as pltpu


def _round_up(x, m):
    return ((x + m - 1) // m) * m


# ----------------------------------------------------------------------------
# Shared fp32 LayerNorm (matches the fp16-safe LayerNorm subclass, eps=1e-5).
# ----------------------------------------------------------------------------
def _layer_norm(v, g, b, eps=1e-5):
    mu = jnp.mean(v, axis=-1, keepdims=True)
    c = v - mu
    var = jnp.mean(c * c, axis=-1, keepdims=True)
    return c * jax.lax.rsqrt(var + eps) * g + b


# ----------------------------------------------------------------------------
# Kernel 1: patch embedding (conv as matmul) + [CLS] + pos embed + ln_pre.
# Batch-tiled (Bt images per grid step); rows are stored directly into the
# padded (Bt, Lp, D) output block (no concatenate).
# ----------------------------------------------------------------------------
def embed_kernel(patch_ref,    # (Bt, P, 3*p*p)
                 wpatch_ref,   # (3*p*p, D)  bf16
                 cls_ref,      # (1, D)
                 pos_ref,      # (Lp, D)     zero-padded past L
                 g_ref,        # (1, D)  ln_pre gamma
                 b_ref,        # (1, D)  ln_pre beta
                 out_ref):     # (Bt, Lp, D)
    Bt, P, Cpp = patch_ref.shape
    Lp, D = pos_ref.shape
    g = g_ref[...]
    b = b_ref[...]

    emb = jnp.dot(patch_ref[...].reshape(Bt * P, Cpp).astype(jnp.bfloat16),
                  wpatch_ref[...],
                  preferred_element_type=jnp.float32).reshape(Bt, P, D)

    # CLS row (identical for every image in the tile).
    cls_row = _layer_norm(cls_ref[...].astype(jnp.float32) + pos_ref[0:1, :], g, b)
    out_ref[:, 0:1, :] = jnp.broadcast_to(cls_row, (Bt, 1, D))

    # Patch rows.
    out_ref[:, 1:1 + P, :] = _layer_norm(emb + pos_ref[1:1 + P, :], g, b)

    # Padding rows: LayerNorm(0) == beta. They are masked as attention keys and
    # never read as outputs, so any finite value is fine.
    pad = Lp - 1 - P
    if pad > 0:
        out_ref[:, 1 + P:, :] = jnp.broadcast_to(b, (Bt, pad, D))


# ----------------------------------------------------------------------------
# Kernel 2: fused transformer stack + ln_post(CLS) + output projection.
# grid = (num_batch_tiles, layers); the activation for the current batch tile
# lives in VMEM scratch across the layer axis (accumulator pattern).
# ----------------------------------------------------------------------------
def transformer_layer_kernel(
    x_ref,                          # (Bt, Lp, D)  ln_pre'd input (read at layer 0)
    ln1_g_ref, ln1_b_ref,           # (1, D)
    wqkv_ref,                       # (D, 3D)  bf16
    bqkv_ref,                       # (1, 3D)
    wo_ref,                         # (D, D)   bf16
    bo_ref,                         # (1, D)
    ln2_g_ref, ln2_b_ref,           # (1, D)
    wfc_ref,                        # (D, 4D)  bf16
    bfc_ref,                        # (1, 4D)
    wproj_ref,                      # (4D, D)  bf16
    bproj_ref,                      # (1, D)
    lnpost_g_ref, lnpost_b_ref,     # (1, D)   fused head
    proj_ref,                       # (D, out_dim) bf16
    out_ref,                        # (Bt, out_dim)
    x_acc,                          # VMEM (Bt, Lp, D) f32  (carried across layers)
    *,
    n_head: int,
    seq_len: int,
):
    layer = pl.program_id(1)
    n_layers = pl.num_programs(1)
    Bt, Lp, D = x_acc.shape
    H = n_head
    Dh = D // H
    M = Bt * Lp

    @pl.when(layer == 0)
    def _():
        x_acc[...] = x_ref[...].astype(jnp.float32)

    x = x_acc[...].reshape(M, D)                                  # (Bt*Lp, D) f32

    # ---------------- attention branch (pre-LN) ----------------
    y = _layer_norm(x, ln1_g_ref[...], ln1_b_ref[...]).astype(jnp.bfloat16)
    qkv = jnp.dot(y, wqkv_ref[...], preferred_element_type=jnp.float32)
    qkv = qkv + bqkv_ref[...]                                     # (Bt*Lp, 3D) f32

    # Cast (and fold the 1/sqrt(Dh) scale into q) BEFORE the head-split
    # transposes so the relayouts move bf16, not f32.
    q = (qkv[:, 0 * D:1 * D] * (Dh ** -0.5)).astype(jnp.bfloat16)
    k = qkv[:, 1 * D:2 * D].astype(jnp.bfloat16)
    v = qkv[:, 2 * D:3 * D].astype(jnp.bfloat16)

    def split_heads(m):   # (Bt*Lp, D) -> (Bt*H, Lp, Dh)
        return jnp.transpose(m.reshape(Bt, Lp, H, Dh),
                             (0, 2, 1, 3)).reshape(Bt * H, Lp, Dh)

    qh, kh, vh = split_heads(q), split_heads(k), split_heads(v)

    # Batched QK^T: (batch*heads) as the dot_general batch dim.
    s = jnp.einsum("bqd,bkd->bqk", qh, kh,
                   preferred_element_type=jnp.float32)            # (Bt*H, Lp, Lp)
    if seq_len < Lp:   # mask padded key positions (static shapes)
        key_idx = jax.lax.broadcasted_iota(jnp.int32, (1, 1, Lp), 2)
        s = jnp.where(key_idx < seq_len, s, -1e30)

    s = s - jnp.max(s, axis=-1, keepdims=True)
    e = jnp.exp(s)
    p = e * pl.reciprocal(jnp.sum(e, axis=-1, keepdims=True), approx=True)

    ctx = jnp.einsum("bqk,bkd->bqd", p.astype(jnp.bfloat16), vh,
                     preferred_element_type=jnp.float32)          # (Bt*H, Lp, Dh)
    ctx = ctx.astype(jnp.bfloat16)                                # bf16 before merge
    ctx = jnp.transpose(ctx.reshape(Bt, H, Lp, Dh), (0, 2, 1, 3)).reshape(M, D)

    attn_out = jnp.dot(ctx, wo_ref[...], preferred_element_type=jnp.float32)
    x = x + attn_out + bo_ref[...]

    # ---------------- MLP branch (pre-LN, QuickGELU) ----------------
    z = _layer_norm(x, ln2_g_ref[...], ln2_b_ref[...]).astype(jnp.bfloat16)
    h = jnp.dot(z, wfc_ref[...], preferred_element_type=jnp.float32) + bfc_ref[...]
    h = h * jax.nn.sigmoid(1.702 * h)
    mlp_out = jnp.dot(h.astype(jnp.bfloat16), wproj_ref[...],
                      preferred_element_type=jnp.float32)
    x = x + mlp_out + bproj_ref[...]

    x_acc[...] = x.reshape(Bt, Lp, D)

    # Fused head: ln_post on the CLS token + output projection, last layer only.
    @pl.when(layer == n_layers - 1)
    def _():
        xcls = x.reshape(Bt, Lp, D)[:, 0, :]                      # (Bt, D)
        cn = _layer_norm(xcls, lnpost_g_ref[...], lnpost_b_ref[...])
        out_ref[...] = jnp.dot(cn.astype(jnp.bfloat16), proj_ref[...],
                               preferred_element_type=jnp.float32
                               ).astype(out_ref.dtype)


# ----------------------------------------------------------------------------
# Wrappers.
# ----------------------------------------------------------------------------
PARAM_ORDER = ("ln1_g", "ln1_b", "wqkv", "bqkv", "wo", "bo",
               "ln2_g", "ln2_b", "wfc", "bfc", "wproj", "bproj")
MATMUL_WEIGHTS = ("wqkv", "wo", "wfc", "wproj")


def _extract_patches(x, patch_size):
    """(B, 3, H, W) -> (B, num_patches, 3*p*p) matching conv1 weight flattening."""
    B, C, H, W = x.shape
    p = patch_size
    hp, wp = H // p, W // p
    x = x.reshape(B, C, hp, p, wp, p)
    x = x.transpose(0, 2, 4, 1, 3, 5)            # (B, hp, wp, C, p, p)
    return x.reshape(B, hp * wp, C * p * p)


def _stack_layer_params(layer_params):
    stacked = {}
    for name in PARAM_ORDER:
        arr = jnp.stack([lp[name] for lp in layer_params], axis=0)
        if name in MATMUL_WEIGHTS:
            arr = arr.astype(jnp.bfloat16)       # halve weight HBM/VMEM traffic
        stacked[name] = arr
    return stacked


def _vmem_budget_bytes():
    """~85% of physical VMEM (64 MiB on v7x, 128 MiB on v5e/v6e); conservative
    64 MiB fallback if the query is unavailable."""
    phys = 64 * 1024 * 1024
    try:
        phys = int(getattr(pltpu.get_tpu_info(), "vmem_capacity_bytes", phys))
    except Exception:
        pass
    return int(phys * 0.85)


def _transformer_vmem_bytes(bt, Lp, D, H, out_dim):
    """Upper-bound estimate of live VMEM for one transformer grid step."""
    bf16, f32 = 2, 4
    weights = 2 * 12 * D * D * bf16                      # matmul weights, double-buffered
    small = 2 * (15 * D * f32 + D * out_dim * bf16)      # biases / LN params / proj
    x_in = 2 * bt * Lp * D * f32                         # input activation block (2 bufs)
    out = 2 * bt * out_dim * f32                         # output block (2 bufs)
    acc = bt * Lp * D * f32                              # carried activation scratch
    attn = 2 * bt * H * Lp * Lp * f32                    # softmax temporaries
    qkv = bt * Lp * 3 * D * (f32 + bf16)                 # qkv f32 + bf16 head copies
    mlp = bt * Lp * 4 * D * (f32 + bf16)                 # MLP hidden f32 + bf16 copy
    misc = 3 * bt * Lp * D * f32                         # LN temps / ctx / residual
    return weights + small + x_in + out + acc + attn + qkv + mlp + misc


def _pick_batch_tile(n, Lp, D, H, out_dim, budget):
    # Largest batch tile whose per-step footprint fits the generation budget.
    # (On v7x an even number of resulting tiles keeps both TensorCores busy.)
    for bt in (16, 8, 4, 2, 1):
        if bt > max(n, 1):
            continue
        if _transformer_vmem_bytes(bt, Lp, D, H, out_dim) <= budget:
            return bt
    return 1


def run_transformer(x_emb, stacked, lnpost_g, lnpost_b, proj_bf16, *,
                    n_head, seq_len, out_dim, bt, vmem_limit):
    Np, Lp, D = x_emb.shape
    n_layers = stacked["wqkv"].shape[0]

    in_specs = [pl.BlockSpec((bt, Lp, D), lambda b, l: (b, 0, 0))]
    operands = [x_emb]
    for name in PARAM_ORDER:
        arr = stacked[name]
        per_layer_shape = arr.shape[1:]
        nd = len(per_layer_shape)
        in_specs.append(
            pl.BlockSpec((None,) + per_layer_shape,
                         lambda b, l, _nd=nd: (l,) + (0,) * _nd))
        operands.append(arr)
    # Fused head params (constant index maps -> DMA'd once, kept resident).
    in_specs += [pl.BlockSpec((1, D), lambda b, l: (0, 0)),
                 pl.BlockSpec((1, D), lambda b, l: (0, 0)),
                 pl.BlockSpec((D, out_dim), lambda b, l: (0, 0))]
    operands += [lnpost_g, lnpost_b, proj_bf16]

    kernel = functools.partial(transformer_layer_kernel,
                               n_head=n_head, seq_len=seq_len)
    return pl.pallas_call(
        kernel,
        out_shape=jax.ShapeDtypeStruct((Np, out_dim), jnp.float32),
        grid=(Np // bt, n_layers),
        in_specs=in_specs,
        out_specs=pl.BlockSpec((bt, out_dim), lambda b, l: (b, 0)),
        scratch_shapes=[pltpu.VMEM((bt, Lp, D), jnp.float32)],
        compiler_params=pltpu.CompilerParams(
            dimension_semantics=("parallel", "arbitrary"),
            vmem_limit_bytes=vmem_limit,
        ),
    )(*operands)


def vit_forward(x_img, params, *, n_head, patch_size):
    B = x_img.shape[0]
    D = params["conv_w"].shape[0]
    out_dim = params["proj"].shape[1]

    patches = _extract_patches(x_img, patch_size)        # (B, P, 3*p*p)
    _, P, Cpp = patches.shape
    L = P + 1                                            # +CLS
    Lp = _round_up(L, 128)                               # lane-dense seq padding

    budget = _vmem_budget_bytes()
    bt = _pick_batch_tile(B, Lp, D, n_head, out_dim, budget)
    Np = _round_up(B, bt)
    if Np != B:
        patches = jnp.pad(patches, ((0, Np - B), (0, 0), (0, 0)))

    wpatch = params["conv_w"].reshape(D, Cpp).T.astype(jnp.bfloat16)   # (Cpp, D)
    pos_pad = jnp.zeros((Lp, D), jnp.float32).at[:L].set(params["pos"])

    # 1) patch embed + [CLS] + pos + ln_pre (batch-tiled).
    x_emb = pl.pallas_call(
        embed_kernel,
        out_shape=jax.ShapeDtypeStruct((Np, Lp, D), jnp.float32),
        grid=(Np // bt,),
        in_specs=[
            pl.BlockSpec((bt, P, Cpp), lambda i: (i, 0, 0)),
            pl.BlockSpec((Cpp, D), lambda i: (0, 0)),
            pl.BlockSpec((1, D), lambda i: (0, 0)),
            pl.BlockSpec((Lp, D), lambda i: (0, 0)),
            pl.BlockSpec((1, D), lambda i: (0, 0)),
            pl.BlockSpec((1, D), lambda i: (0, 0)),
        ],
        out_specs=pl.BlockSpec((bt, Lp, D), lambda i: (i, 0, 0)),
        compiler_params=pltpu.CompilerParams(
            dimension_semantics=("parallel",),
            vmem_limit_bytes=budget,
        ),
    )(patches, wpatch, params["cls"], pos_pad,
      params["lnpre_g"], params["lnpre_b"])

    # 2) fused transformer stack + ln_post(CLS) + projection (one pallas_call).
    stacked = _stack_layer_params(params["layers"])
    out = run_transformer(
        x_emb, stacked, params["lnpost_g"], params["lnpost_b"],
        params["proj"].astype(jnp.bfloat16),
        n_head=n_head, seq_len=L, out_dim=out_dim, bt=bt, vmem_limit=budget)
    return out[:B]


# ----------------------------------------------------------------------------
# Synthetic parameters (shapes follow the PyTorch module; linear weights are
# stored pre-transposed as (in, out) so kernels do x @ W).
# ----------------------------------------------------------------------------
def init_layer_params(key, width):
    D = width
    ks = jax.random.split(key, 12)
    s = 0.1
    return {
        "ln1_g": 1.0 + 0.1 * jax.random.normal(ks[0], (1, D), jnp.float32),
        "ln1_b": 0.1 * jax.random.normal(ks[1], (1, D), jnp.float32),
        "wqkv": s * jax.random.normal(ks[2], (D, 3 * D), jnp.float32),
        "bqkv": s * jax.random.normal(ks[3], (1, 3 * D), jnp.float32),
        "wo": s * jax.random.normal(ks[4], (D, D), jnp.float32),
        "bo": s * jax.random.normal(ks[5], (1, D), jnp.float32),
        "ln2_g": 1.0 + 0.1 * jax.random.normal(ks[6], (1, D), jnp.float32),
        "ln2_b": 0.1 * jax.random.normal(ks[7], (1, D), jnp.float32),
        "wfc": s * jax.random.normal(ks[8], (D, 4 * D), jnp.float32),
        "bfc": s * jax.random.normal(ks[9], (1, 4 * D), jnp.float32),
        "wproj": s * jax.random.normal(ks[10], (4 * D, D), jnp.float32),
        "bproj": s * jax.random.normal(ks[11], (1, D), jnp.float32),
    }


def init_params(key, *, width, layers, patch, input_res, output_dim):
    D = width
    L = (input_res // patch) ** 2 + 1
    scale = D ** -0.5
    ks = jax.random.split(key, 8 + layers)
    return {
        "conv_w": 0.05 * jax.random.normal(ks[0], (D, 3, patch, patch), jnp.float32),
        "cls": scale * jax.random.normal(ks[1], (1, D), jnp.float32),
        "pos": scale * jax.random.normal(ks[2], (L, D), jnp.float32),
        "lnpre_g": 1.0 + 0.1 * jax.random.normal(ks[3], (1, D), jnp.float32),
        "lnpre_b": 0.1 * jax.random.normal(ks[4], (1, D), jnp.float32),
        "lnpost_g": 1.0 + 0.1 * jax.random.normal(ks[5], (1, D), jnp.float32),
        "lnpost_b": 0.1 * jax.random.normal(ks[6], (1, D), jnp.float32),
        "proj": scale * jax.random.normal(ks[7], (D, output_dim), jnp.float32),
        "layers": [init_layer_params(ks[8 + i], D) for i in range(layers)],
    }


# ----------------------------------------------------------------------------
# Pure-JAX f32 reference (faithful to the torch forward, incl. the conv).
# ----------------------------------------------------------------------------
def _ref_ln(v, g, b, eps=1e-5):
    mu = v.mean(-1, keepdims=True)
    var = ((v - mu) ** 2).mean(-1, keepdims=True)
    return (v - mu) / jnp.sqrt(var + eps) * g + b


def ref_vit(x_img, params, *, n_head, patch_size):
    B = x_img.shape[0]
    D = params["conv_w"].shape[0]
    feat = jax.lax.conv_general_dilated(
        x_img, params["conv_w"], (patch_size, patch_size), "VALID",
        dimension_numbers=("NCHW", "OIHW", "NCHW"))
    feat = feat.reshape(B, D, -1).transpose(0, 2, 1)      # (B, P, D)
    x = jnp.concatenate([jnp.broadcast_to(params["cls"], (B, 1, D)), feat], axis=1)
    x = x + params["pos"]
    x = _ref_ln(x, params["lnpre_g"], params["lnpre_b"])

    L = x.shape[1]
    H = n_head
    Dh = D // H
    for lp in params["layers"]:
        y = _ref_ln(x, lp["ln1_g"], lp["ln1_b"])
        qkv = y @ lp["wqkv"] + lp["bqkv"]
        q, k, v = jnp.split(qkv, 3, axis=-1)
        q = q.reshape(B, L, H, Dh).transpose(0, 2, 1, 3) * Dh ** -0.5
        k = k.reshape(B, L, H, Dh).transpose(0, 2, 1, 3)
        v = v.reshape(B, L, H, Dh).transpose(0, 2, 1, 3)
        a = jax.nn.softmax(q @ k.transpose(0, 1, 3, 2), axis=-1)
        ctx = (a @ v).transpose(0, 2, 1, 3).reshape(B, L, D)
        x = x + ctx @ lp["wo"] + lp["bo"]
        z = _ref_ln(x, lp["ln2_g"], lp["ln2_b"])
        h = z @ lp["wfc"] + lp["bfc"]
        h = h * jax.nn.sigmoid(1.702 * h)
        x = x + h @ lp["wproj"] + lp["bproj"]

    xc = _ref_ln(x[:, 0, :], params["lnpost_g"], params["lnpost_b"])
    return xc @ params["proj"]


if __name__ == "__main__":
    # Small config: 16x16 image, patch 4 -> 16 patches + CLS = 17 tokens
    # (padded to Lp=128), width 32, 2 layers, 4 heads, output dim 16, batch 2.
    INPUT_RES, PATCH = 16, 4
    WIDTH, LAYERS, HEADS, OUT_DIM = 32, 2, 4, 16
    BATCH = 2

    key = jax.random.PRNGKey(0)
    kx, kp = jax.random.split(key)
    x_img = jax.random.normal(kx, (BATCH, 3, INPUT_RES, INPUT_RES), jnp.float32)
    params = init_params(kp, width=WIDTH, layers=LAYERS, patch=PATCH,
                         input_res=INPUT_RES, output_dim=OUT_DIM)

    out = jax.block_until_ready(
        vit_forward(x_img, params, n_head=HEADS, patch_size=PATCH))
    ref = jax.block_until_ready(
        ref_vit(x_img, params, n_head=HEADS, patch_size=PATCH))

    # bf16 matmul weights + approx softmax reciprocal -> relaxed tolerance vs f32 ref.
    np.testing.assert_allclose(np.asarray(out), np.asarray(ref), rtol=2e-2, atol=2e-2)
    print("KERNEL_OK")
</pallas_src>

<mosaic_0001>
module attributes {stable_mosaic.version = 11 : i64} {
  func.func @embed_kernel(%arg0: i32, %arg1: memref<2x16x48xf32, #tpu.memory_space<vmem>>, %arg2: memref<48x32xbf16, #tpu.memory_space<vmem>>, %arg3: memref<1x32xf32, #tpu.memory_space<vmem>>, %arg4: memref<128x32xf32, #tpu.memory_space<vmem>>, %arg5: memref<1x32xf32, #tpu.memory_space<vmem>>, %arg6: memref<1x32xf32, #tpu.memory_space<vmem>>, %arg7: memref<2x128x32xf32, #tpu.memory_space<vmem>>) attributes {dimension_semantics = [#tpu.dimension_semantics<parallel>], iteration_bounds = array<i64: 1>, scalar_prefetch = 0 : i64, scratch_operands = 0 : i64, tpu.core_type = #tpu.core_type<tc>, window_params = [{transform_indices = @transform_0, window_bounds = array<i64: 2, 16, 48>}, {pipeline_mode = #tpu.pipeline_mode<synchronous>, transform_indices = @transform_1, window_bounds = array<i64: 48, 32>}, {pipeline_mode = #tpu.pipeline_mode<synchronous>, transform_indices = @transform_2, window_bounds = array<i64: 1, 32>}, {pipeline_mode = #tpu.pipeline_mode<synchronous>, transform_indices = @transform_3, window_bounds = array<i64: 128, 32>}, {pipeline_mode = #tpu.pipeline_mode<synchronous>, transform_indices = @transform_4, window_bounds = array<i64: 1, 32>}, {pipeline_mode = #tpu.pipeline_mode<synchronous>, transform_indices = @transform_5, window_bounds = array<i64: 1, 32>}, {transform_indices = @transform_6, window_bounds = array<i64: 2, 128, 32>}]} {
    %c0 = arith.constant 0 : index
    %c0_0 = arith.constant 0 : index
    %0 = vector.load %arg5[%c0, %c0_0] : memref<1x32xf32, #tpu.memory_space<vmem>>, vector<1x32xf32>
    %c0_1 = arith.constant 0 : index
    %c0_2 = arith.constant 0 : index
    %1 = vector.load %arg6[%c0_1, %c0_2] : memref<1x32xf32, #tpu.memory_space<vmem>>, vector<1x32xf32>
    %c0_3 = arith.constant 0 : index
    %c0_4 = arith.constant 0 : index
    %c0_5 = arith.constant 0 : index
    %2 = vector.load %arg1[%c0_3, %c0_4, %c0_5] : memref<2x16x48xf32, #tpu.memory_space<vmem>>, vector<2x16x48xf32>
    %3 = vector.shape_cast %2 : vector<2x16x48xf32> to vector<32x48xf32>
    %4 = arith.truncf %3 : vector<32x48xf32> to vector<32x48xbf16>
    %c0_6 = arith.constant 0 : index
    %c0_7 = arith.constant 0 : index
    %5 = vector.load %arg2[%c0_6, %c0_7] : memref<48x32xbf16, #tpu.memory_space<vmem>>, vector<48x32xbf16>
    %cst = arith.constant dense<0.000000e+00> : vector<32x32xf32>
    %6 = tpu.matmul %4, %5, %cst {dimension_numbers = #tpu.dot_dimension_numbers<[1], [0], [0], [1], [0, 0, 1, 1], [], []>} : vector<32x48xbf16>, vector<48x32xbf16>, vector<32x32xf32> -> vector<32x32xf32>
    %7 = vector.shape_cast %6 : vector<32x32xf32> to vector<2x16x32xf32>
    %c0_8 = arith.constant 0 : index
    %c0_9 = arith.constant 0 : index
    %8 = vector.load %arg3[%c0_8, %c0_9] : memref<1x32xf32, #tpu.memory_space<vmem>>, vector<1x32xf32>
    %c0_10 = arith.constant 0 : index
    %c0_11 = arith.constant 0 : index
    %9 = vector.load %arg4[%c0_10, %c0_11] : memref<128x32xf32, #tpu.memory_space<vmem>>, vector<1x32xf32>
    %10 = arith.addf %8, %9 : vector<1x32xf32>
    %cst_12 = arith.constant dense<0.000000e+00> : vector<1xf32>
    %11 = vector.multi_reduction <add>, %10, %cst_12 [1] : vector<1x32xf32> to vector<1xf32>
    %12 = vector.shape_cast %11 : vector<1xf32> to vector<1x1xf32>
    %cst_13 = arith.constant 3.200000e+01 : f32
    %13 = vector.broadcast %cst_13 : f32 to vector<1x1xf32>
    %14 = arith.divf %12, %13 : vector<1x1xf32>
    %15 = vector.broadcast %14 : vector<1x1xf32> to vector<1x32xf32>
    %16 = arith.subf %10, %15 : vector<1x32xf32>
    %17 = arith.mulf %16, %16 : vector<1x32xf32>
    %cst_14 = arith.constant dense<0.000000e+00> : vector<1xf32>
    %18 = vector.multi_reduction <add>, %17, %cst_14 [1] : vector<1x32xf32> to vector<1xf32>
    %19 = vector.shape_cast %18 : vector<1xf32> to vector<1x1xf32>
    %cst_15 = arith.constant 3.200000e+01 : f32
    %20 = vector.broadcast %cst_15 : f32 to vector<1x1xf32>
    %21 = arith.divf %19, %20 : vector<1x1xf32>
    %cst_16 = arith.constant 9.99999974E-6 : f32
    %22 = vector.broadcast %cst_16 : f32 to vector<1x1xf32>
    %23 = arith.addf %21, %22 : vector<1x1xf32>
    %24 = math.rsqrt %23 : vector<1x1xf32>
    %25 = vector.broadcast %24 : vector<1x1xf32> to vector<1x32xf32>
    %26 = arith.mulf %16, %25 : vector<1x32xf32>
    %27 = arith.mulf %26, %0 : vector<1x32xf32>
    %28 = arith.addf %27, %1 : vector<1x32xf32>
    %29 = vector.shape_cast %28 : vector<1x32xf32> to vector<1x1x32xf32>
    %30 = vector.broadcast %29 : vector<1x1x32xf32> to vector<2x1x32xf32>
    %c0_17 = arith.constant 0 : index
    %c0_18 = arith.constant 0 : index
    %c0_19 = arith.constant 0 : index
    %31 = vector.load %arg7[%c0_17, %c0_18, %c0_19] : memref<2x128x32xf32, #tpu.memory_space<vmem>>, vector<2x1x32xf32>
    tpu.vector_store %arg7[%c0_17, %c0_18, %c0_19], %30 {strides = array<i32>} : memref<2x128x32xf32, #tpu.memory_space<vmem>>, vector<2x1x32xf32>,
    %c1 = arith.constant 1 : index
    %c0_20 = arith.constant 0 : index
    %32 = vector.load %arg4[%c1, %c0_20] : memref<128x32xf32, #tpu.memory_space<vmem>>, vector<16x32xf32>
    %33 = vector.shape_cast %32 : vector<16x32xf32> to vector<1x16x32xf32>
    %34 = vector.broadcast %33 : vector<1x16x32xf32> to vector<2x16x32xf32>
    %35 = arith.addf %7, %34 : vector<2x16x32xf32>
    %cst_21 = arith.constant dense<0.000000e+00> : vector<2x16xf32>
    %36 = vector.multi_reduction <add>, %35, %cst_21 [2] : vector<2x16x32xf32> to vector<2x16xf32>
    %37 = vector.shape_cast %36 : vector<2x16xf32> to vector<2x16x1xf32>
    %cst_22 = arith.constant 3.200000e+01 : f32
    %38 = vector.broadcast %cst_22 : f32 to vector<2x16x1xf32>
    %39 = arith.divf %37, %38 : vector<2x16x1xf32>
    %40 = vector.broadcast %39 : vector<2x16x1xf32> to vector<2x16x32xf32>
    %41 = arith.subf %35, %40 : vector<2x16x32xf32>
    %42 = arith.mulf %41, %41 : vector<2x16x32xf32>
    %cst_23 = arith.constant dense<0.000000e+00> : vector<2x16xf32>
    %43 = vector.multi_reduction <add>, %42, %cst_23 [2] : vector<2x16x32xf32> to vector<2x16xf32>
    %44 = vector.shape_cast %43 : vector<2x16xf32> to vector<2x16x1xf32>
    %cst_24 = arith.constant 3.200000e+01 : f32
    %45 = vector.broadcast %cst_24 : f32 to vector<2x16x1xf32>
    %46 = arith.divf %44, %45 : vector<2x16x1xf32>
    %cst_25 = arith.constant 9.99999974E-6 : f32
    %47 = vector.broadcast %cst_25 : f32 to vector<2x16x1xf32>
    %48 = arith.addf %46, %47 : vector<2x16x1xf32>
    %49 = math.rsqrt %48 : vector<2x16x1xf32>
    %50 = vector.broadcast %49 : vector<2x16x1xf32> to vector<2x16x32xf32>
    %51 = arith.mulf %41, %50 : vector<2x16x32xf32>
    %52 = vector.shape_cast %0 : vector<1x32xf32> to vector<1x1x32xf32>
    %53 = vector.broadcast %52 : vector<1x1x32xf32> to vector<2x16x32xf32>
    %54 = arith.mulf %51, %53 : vector<2x16x32xf32>
    %55 = vector.shape_cast %1 : vector<1x32xf32> to vector<1x1x32xf32>
    %56 = vector.broadcast %55 : vector<1x1x32xf32> to vector<2x16x32xf32>
    %57 = arith.addf %54, %56 : vector<2x16x32xf32>
    %c0_26 = arith.constant 0 : index
    %c1_27 = arith.constant 1 : index
    %c0_28 = arith.constant 0 : index
    %58 = vector.load %arg7[%c0_26, %c1_27, %c0_28] : memref<2x128x32xf32, #tpu.memory_space<vmem>>, vector<2x16x32xf32>
    tpu.vector_store %arg7[%c0_26, %c1_27, %c0_28], %57 {strides = array<i32>} : memref<2x128x32xf32, #tpu.memory_space<vmem>>, vector<2x16x32xf32>,
    %59 = vector.shape_cast %1 : vector<1x32xf32> to vector<1x1x32xf32>
    %60 = vector.broadcast %59 : vector<1x1x32xf32> to vector<2x111x32xf32>
    %c0_29 = arith.constant 0 : index
    %c17 = arith.constant 17 : index
    %c0_30 = arith.constant 0 : index
    %61 = vector.load %arg7[%c0_29, %c17, %c0_30] : memref<2x128x32xf32, #tpu.memory_space<vmem>>, vector<2x111x32xf32>
    tpu.vector_store %arg7[%c0_29, %c17, %c0_30], %60 {strides = array<i32>} : memref<2x128x32xf32, #tpu.memory_space<vmem>>, vector<2x111x32xf32>,
    return
  }
  func.func @transform_0(%arg0: i32) -> (i32, i32, i32) {
    %c0_i32 = arith.constant 0 : i32
    %c0_i32_0 = arith.constant 0 : i32
    %c0_i32_1 = arith.constant 0 : i32
    return %arg0, %c0_i32, %c0_i32_0 : i32, i32, i32
  }
  func.func @transform_1(%arg0: i32) -> (i32, i32) {
    %c0_i32 = arith.constant 0 : i32
    %c0_i32_0 = arith.constant 0 : i32
    %c0_i32_1 = arith.constant 0 : i32
    return %c0_i32, %c0_i32_0 : i32, i32
  }
  func.func @transform_2(%arg0: i32) -> (i32, i32) {
    %c0_i32 = arith.constant 0 : i32
    %c0_i32_0 = arith.constant 0 : i32
    %c0_i32_1 = arith.constant 0 : i32
    return %c0_i32, %c0_i32_0 : i32, i32
  }
  func.func @transform_3(%arg0: i32) -> (i32, i32) {
    %c0_i32 = arith.constant 0 : i32
    %c0_i32_0 = arith.constant 0 : i32
    %c0_i32_1 = arith.constant 0 : i32
    return %c0_i32, %c0_i32_0 : i32, i32
  }
  func.func @transform_4(%arg0: i32) -> (i32, i32) {
    %c0_i32 = arith.constant 0 : i32
    %c0_i32_0 = arith.constant 0 : i32
    %c0_i32_1 = arith.constant 0 : i32
    return %c0_i32, %c0_i32_0 : i32, i32
  }
  func.func @transform_5(%arg0: i32) -> (i32, i32) {
    %c0_i32 = arith.constant 0 : i32
    %c0_i32_0 = arith.constant 0 : i32
    %c0_i32_1 = arith.constant 0 : i32
    return %c0_i32, %c0_i32_0 : i32, i32
  }
  func.func @transform_6(%arg0: i32) -> (i32, i32, i32) {
    %c0_i32 = arith.constant 0 : i32
    %c0_i32_0 = arith.constant 0 : i32
    %c0_i32_1 = arith.constant 0 : i32
    return %arg0, %c0_i32, %c0_i32_0 : i32, i32, i32
  }
}

</mosaic_0001>

<bundles_post_ra>
// kernel: tpu_custom_call.1
= control target key start
LH: loop header
LB: loop body
LE: loop exit
PB: predicated region body
PF: predicated region fallthrough
CT: control target
= control target key end

     0   :  { %vm85_vm0 = vcmask 253952   ;;  %vm56_vm1 = vcmask 392192   ;;  %v300_v13 = vmov 32.0   ;;  %vm125_vm3 = vcmask 261120   ;;  %s598_s1 = inlined_call_operand.vmem [shape: bf16[48,32], index: 1, kind: input, shape index: {}]   ;;  %s599_s2 = inlined_call_operand.vmem [shape: f32[1,32], index: 2, kind: input, shape index: {}]   ;;  %s600_s3 = inlined_call_operand.vmem [shape: f32[128,32], index: 3, kind: input, shape index: {}]   ;;  %s601_s0 = inlined_call_operand.vmem [shape: f32[2,16,48], index: 0, kind: input, shape index: {}]   ;;  %s602_s5 = inlined_call_operand.vmem [shape: f32[1,32], index: 5, kind: input, shape index: {}]   ;;  %s603_s6 = inlined_call_operand.vmem [shape: f32[2,128,32], index: 6, kind: output, shape index: {}]   ;;  %s604_s4 = inlined_call_operand.vmem [shape: f32[1,32], index: 4, kind: input, shape index: {}]  }
   0x1   :  { %v281_v0 = vld [vmem:[%s598_s1 + $0x10] sm:$0xff]  ;;  %v280_v1 = vld [vmem:[%s598_s1 + $0x8] sm:$0xff]  ;;  %v82_v2 = vld [vmem:[%s599_s2] sm:$0x1]  ;;  %288 = vrcp.f32 %v300_v13  ;;  %vm245_vm4 = vcmask 260096  }
   0x2   :  { %68 = vmatpush.bf16.msra.mxu0 %v281_v0  ;;  %282 = vmatpush.bf16.msra.mxu1 %v281_v0  ;;  %v83_v3 = vld [vmem:[%s600_s3] sm:$0x1]  ;;  %v27_v8 = vld [vmem:[%s601_s0 + $0x8] sm:$0xff]  ;;  %v28_v9 = vld [vmem:[%s601_s0 + $0x10] sm:$0xff] }
   0x3   :  { %v84_v4 = vadd.f32 %v83_v3, %v82_v2  ;;  %v279_v5 = vld [vmem:[%s598_s1] sm:$0xff]  ;;  %v29_v10 = vld [vmem:[%s601_s0 + $0x18] sm:$0xff]  ;;  %v120_v27 = vld [vmem:[%s600_s3 + $0x9] sm:$0xff] }
   0x4   :  { %v26_v6 = vld [vmem:[%s601_s0] sm:$0xff]  ;;  %v31_v12 = vpack.c.bf16 %v29_v10, %v28_v9 }
   0x5   :  { %v86_v7 = vsel %vm85_vm0, %v84_v4, 0.0  ;;  %v30_v11 = vpack.c.bf16 %v27_v8, %v26_v6  ;;  %v119_v18 = vld [vmem:[%s600_s3 + $0x1] sm:$0xff]  ;;  %v385_v39 = vld [vmem:[%s602_s5] ss:$0 sm:$0xff] }
   0x6   :  { %69 = vmatpush.bf16.msra.mxu0 %v280_v1  ;;  %283 = vmatpush.bf16.msra.mxu1 %v280_v1  ;;  %232 = vst.msk [vmem:[%s603_s6 + $0x11] sm:$0xff] %vm125_vm3, %v385_v39  ;;  %v25_v8 = vld [vmem:[%s602_s5] sm:$0x1] }
   0x7   :  { %87 = vadd.xlane.f32.xlu0 %v86_v7  ;;  %v289_v14 = vpop.eup %288  ;;  %233 = vst.msk [vmem:[%s603_s6 + $0x19] sm:$0xff] %vm125_vm3, %v385_v39 }
   0x8   :  { %v90_v15 = vmul.f32 32.0, %v289_v14  ;;  %vm94_vm2 = vweird.f32 %v289_v14  ;;  %234 = vst.msk [vmem:[%s603_s6 + $0x21] sm:$0xff] %vm125_vm3, %v385_v39 }
   0x9   :  { %235 = vst.msk [vmem:[%s603_s6 + $0x29] sm:$0xff] %vm125_vm3, %v385_v39 }
   0xa   :  { %70 = vmatpush.bf16.msra.mxu0 %v279_v5  ;;  %284 = vmatpush.bf16.msra.mxu1 %v279_v5  ;;  %v91_v16 = vsub.f32 1.0, %v90_v15  ;;  %236 = vst.msk [vmem:[%s603_s6 + $0x31] sm:$0xff] %vm125_vm3, %v385_v39  ;;  %v24_v5 = vld [vmem:[%s604_s4] sm:$0x1] }
   0xb   :  { %237 = vst.msk [vmem:[%s603_s6 + $0x39] sm:$0xff] %vm125_vm3, %v385_v39 }
   0xc   :  { %v92_v17 = vmul.f32 %v289_v14, %v91_v16  ;;  %238 = vst.msk [vmem:[%s603_s6 + $0x41] sm:$0xff] %vm125_vm3, %v385_v39 }
   0xd   :  { %277 = vmatmul.msk.bf16.vlgmr.msra.gmra.mxu0 %vm56_vm1, %v30_v11  ;;  %278 = vmatmul.msk.bf16.vlgmr.msra.gmra.mxu1 %vm56_vm1, %v31_v12  ;;  %239 = vst.msk [vmem:[%s603_s6 + $0x49] sm:$0xff] %vm125_vm3, %v385_v39 }
   0xe   :  { %v93_v19 = vadd.f32 %v289_v14, %v92_v17  ;;  %240 = vst.msk [vmem:[%s603_s6 + $0x51] sm:$0xff] %vm125_vm3, %v385_v39 }
   0xf   :  { %241 = vst.msk [vmem:[%s603_s6 + $0x59] sm:$0xff] %vm125_vm3, %v385_v39 }
  0x10   :  { %v367_v23 = vsel %vm94_vm2, %v289_v14, %v93_v19  ;;  %242 = vst.msk [vmem:[%s603_s6 + $0x61] sm:$0xff] %vm125_vm3, %v385_v39 }
  0x11   :  { %243 = vst.msk [vmem:[%s603_s6 + $0x69] sm:$0xff] %vm125_vm3, %v385_v39 }
  0x12   :  { %244 = vst.msk [vmem:[%s603_s6 + $0x71] sm:$0xff] %vm125_vm3, %v385_v39 }
  0x13   :  { %246 = vst.msk [vmem:[%s603_s6 + $0x79] sm:$0x7f] %vm245_vm4, %v385_v39 }
  0x14   :  { %247 = vst.msk [vmem:[%s603_s6 + $0x91] sm:$0xff] %vm125_vm3, %v385_v39 }
  0x15   :  { %248 = vst.msk [vmem:[%s603_s6 + $0x99] sm:$0xff] %vm125_vm3, %v385_v39 }
  0x16   :  { %249 = vst.msk [vmem:[%s603_s6 + $0xa1] sm:$0xff] %vm125_vm3, %v385_v39 }
  0x17   :  { %250 = vst.msk [vmem:[%s603_s6 + $0xa9] sm:$0xff] %vm125_vm3, %v385_v39 }
  0x18   :  { %251 = vst.msk [vmem:[%s603_s6 + $0xb1] sm:$0xff] %vm125_vm3, %v385_v39 }
  0x19   :  { %252 = vst.msk [vmem:[%s603_s6 + $0xb9] sm:$0xff] %vm125_vm3, %v385_v39 }
  0x1a   :  { %253 = vst.msk [vmem:[%s603_s6 + $0xc1] sm:$0xff] %vm125_vm3, %v385_v39 }
  0x1b   :  { %254 = vst.msk [vmem:[%s603_s6 + $0xc9] sm:$0xff] %vm125_vm3, %v385_v39 }
  0x1c   :  { %255 = vst.msk [vmem:[%s603_s6 + $0xd1] sm:$0xff] %vm125_vm3, %v385_v39 }
  0x1d   :  { %256 = vst.msk [vmem:[%s603_s6 + $0xd9] sm:$0xff] %vm125_vm3, %v385_v39 }
  0x1e   :  { %257 = vst.msk [vmem:[%s603_s6 + $0xe1] sm:$0xff] %vm125_vm3, %v385_v39 }
  0x1f   :  { %258 = vst.msk [vmem:[%s603_s6 + $0xe9] sm:$0xff] %vm125_vm3, %v385_v39 }
  0x20   :  { %259 = vst.msk [vmem:[%s603_s6 + $0xf1] sm:$0xff] %vm125_vm3, %v385_v39 }
  0x21   :  { %260 = vst.msk [vmem:[%s603_s6 + $0xf9] sm:$0x7f] %vm245_vm4, %v385_v39 }
  0x7a   :  { %v88_v24 = vpop.xlane.xlu0 %87 }
  0x7b   :  { %v96_v26 = vmul.f32 %v367_v23, %v88_v24 }
  0x7d   :  { %v374_v32 = vsub.f32 %v84_v4, %v96_v26 }
  0x7f   :  { %v98_v35 = vmul.f32 %v374_v32, %v374_v32 }
  0x81   :  { %v99_v37 = vsel %vm85_vm0, %v98_v35, 0.0 }
  0x8a   :  { %v72_v20 = vpop.f32.mrf.mxu0  ;;  %v77_v21 = vpop.f32.mrf.mxu1 }
  0x8b   :  { %v121_v22 = vadd.f32 %v119_v18, %v72_v20  ;;  %v123_v36 = vadd.f32 %v119_v18, %v77_v21 }
  0x8d   :  { %v126_v25 = vsel %vm125_vm3, %v121_v22, 0.0  ;;  %v132_v38 = vsel %vm125_vm3, %v123_v36, 0.0 }
  0x8e   :  { %127 = vadd.xlane.f32.xlu0 %v126_v25 }
  0x92   :  { %v74_v28 = vpop.f32.mrf.mxu0  ;;  %v79_v29 = vpop.f32.mrf.mxu1 }
  0x93   :  { %v122_v30 = vadd.f32 %v120_v27, %v74_v28  ;;  %v124_v31 = vadd.f32 %v120_v27, %v79_v29 }
  0x95   :  { %v135_v33 = vsel %vm125_vm3, %v124_v31, 0.0  ;;  %v129_v34 = vsel %vm125_vm3, %v122_v30, 0.0 }
  0x96   :  { %136 = vadd.xlane.f32.xlu2 %v135_v33  ;;  %130 = vadd.xlane.f32.xlu1 %v129_v34  ;;  %v286_v33 = vld [vmem:[%s604_s4] ss:$0 sm:$0xff] }
  0x9e   :  { %100 = vadd.xlane.f32.xlu2 %v99_v37  ;;  %133 = vadd.xlane.f32.xlu1 %v132_v38 }
 0x101   :  { %v128_v40 = vpop.xlane.xlu0 %127 }
 0x102   :  { %v138_v41 = vmul.f32 %v128_v40, %v367_v23 }
 0x104   :  { %v493_v42 = vsub.f32 %v121_v22, %v138_v41 }
 0x106   :  { %v146_v43 = vmul.f32 %v493_v42, %v493_v42 }
 0x108   :  { %v150_v44 = vsel %vm125_vm3, %v146_v43, 0.0 }
 0x109   :  { %v137_v45 = vpop.xlane.xlu2 %136  ;;  %151 = vadd.xlane.f32.xlu0 %v150_v44  ;;  %v131_v46 = vpop.xlane.xlu1 %130 }
 0x10a   :  { %v141_v47 = vmul.f32 %v137_v45, %v367_v23  ;;  %v139_v48 = vmul.f32 %v131_v46, %v367_v23 }
 0x10c   :  { %v535_v49 = vsub.f32 %v124_v31, %v141_v47  ;;  %v537_v50 = vsub.f32 %v122_v30, %v139_v48 }
 0x10e   :  { %v149_v51 = vmul.f32 %v535_v49, %v535_v49  ;;  %v147_v52 = vmul.f32 %v537_v50, %v537_v50 }
 0x110   :  { %v159_v53 = vsel %vm125_vm3, %v149_v51, 0.0  ;;  %v153_v54 = vsel %vm125_vm3, %v147_v52, 0.0 }
 0x111   :  { %v101_v55 = vpop.xlane.xlu2 %100  ;;  %160 = vadd.xlane.f32.xlu0 %v159_v53  ;;  %154 = vadd.xlane.f32.xlu1 %v153_v54  ;;  %v134_v56 = vpop.xlane.xlu1 %133 }
 0x112   :  { %v102_v57 = vmul.f32 %v101_v55, %v367_v23  ;;  %v140_v58 = vmul.f32 %v134_v56, %v367_v23 }
 0x114   :  { %v103_v59 = vadd.f32 1e-05, %v102_v57  ;;  %v547_v60 = vsub.f32 %v123_v36, %v140_v58 }
 0x116   :  { %290 = vrsqrt.f32 %v103_v59  ;;  %v148_v61 = vmul.f32 %v547_v60, %v547_v60  ;;  %vm110_vm5 = vweird.f32 %v103_v59 }
 0x118   :  { %v156_v62 = vsel %vm125_vm3, %v148_v61, 0.0 }
 0x119   :  { %157 = vadd.xlane.f32.xlu2 %v156_v62 }
 0x11c   :  { %v291_v63 = vpop.eup %290 }
 0x11d   :  { %v105_v0 = vmul.f32 %v291_v63, %v103_v59  ;;  %vm111_vm6 = vweird.f32 %v291_v63 }
 0x11e   :  { %vm112_vm7 = vmor %vm110_vm5, %vm111_vm6 }
 0x11f   :  { %v106_v1 = vmul.f32 %v291_v63, %v105_v0 }
 0x121   :  { %v107_v2 = vmul.f32 0.5, %v106_v1 }
 0x123   :  { %v108_v3 = vsub.f32 1.5, %v107_v2 }
 0x125   :  { %v109_v4 = vmul.f32 %v291_v63, %v108_v3 }
 0x127   :  { %v113_v6 = vsel %vm112_vm7, %v291_v63, %v109_v4 }
 0x128   :  { %v114_v7 = vmul.f32 %v113_v6, %v374_v32 }
 0x12a   :  { %v115_v9 = vmul.f32 %v114_v7, %v24_v5 }
 0x12c   :  { %v116_v10 = vadd.f32 %v115_v9, %v25_v8 }
 0x12e   :  { %117 = vst.msk [vmem:[%s603_s6] sm:$0x1] %vm85_vm0, %v116_v10 }
 0x12f   :  { %118 = vst.msk [vmem:[%s603_s6 + $0x80] sm:$0x1] %vm85_vm0, %v116_v10 }
 0x17c   :  { %v152_v11 = vpop.xlane.xlu0 %151 }
 0x17d   :  { %v162_v12 = vmul.f32 %v152_v11, %v367_v23 }
 0x17f   :  { %v166_v13 = vadd.f32 1e-05, %v162_v12 }
 0x181   :  { %292 = vrsqrt.f32 %v166_v13  ;;  %vm176_vm9 = vweird.f32 %v166_v13 }
 0x184   :  { %v161_v14 = vpop.xlane.xlu0 %160  ;;  %v155_v15 = vpop.xlane.xlu1 %154 }
 0x185   :  { %v165_v16 = vmul.f32 %v161_v14, %v367_v23  ;;  %v163_v17 = vmul.f32 %v155_v15, %v367_v23 }
 0x187   :  { %v293_v18 = vpop.eup %292  ;;  %v169_v19 = vadd.f32 1e-05, %v165_v16  ;;  %v167_v20 = vadd.f32 1e-05, %v163_v17 }
 0x188   :  { %v171_v21 = vmul.f32 %v293_v18, %v166_v13  ;;  %vm177_vm8 = vweird.f32 %v293_v18 }
 0x189   :  { %294 = vrsqrt.f32 %v169_v19  ;;  %vm178_vm10 = vmor %vm176_vm9, %vm177_vm8  ;;  %vm206_vm13 = vweird.f32 %v169_v19  ;;  %vm186_vm15 = vweird.f32 %v167_v20 }
 0x18a   :  { %v172_v22 = vmul.f32 %v293_v18, %v171_v21  ;;  %296 = vrsqrt.f32 %v167_v20 }
 0x18c   :  { %v173_v24 = vmul.f32 0.5, %v172_v22  ;;  %v158_v25 = vpop.xlane.xlu2 %157 }
 0x18d   :  { %v164_v26 = vmul.f32 %v158_v25, %v367_v23 }
 0x18e   :  { %v174_v27 = vsub.f32 1.5, %v173_v24 }
 0x18f   :  { %v295_v28 = vpop.eup %294  ;;  %v168_v29 = vadd.f32 1e-05, %v164_v26 }
 0x190   :  { %v297_v30 = vpop.eup %296  ;;  %v175_v31 = vmul.f32 %v293_v18, %v174_v27  ;;  %v201_v32 = vmul.f32 %v295_v28, %v169_v19  ;;  %vm207_vm11 = vweird.f32 %v295_v28 }
 0x191   :  { %v181_v34 = vmul.f32 %v297_v30, %v167_v20  ;;  %298 = vrsqrt.f32 %v168_v29  ;;  %vm187_vm12 = vweird.f32 %v297_v30  ;;  %vm208_vm14 = vmor %vm206_vm13, %vm207_vm11  ;;  %vm196_vm2 = vweird.f32 %v168_v29 }
 0x192   :  { %v179_v35 = vsel %vm178_vm10, %v293_v18, %v175_v31  ;;  %v202_v36 = vmul.f32 %v295_v28, %v201_v32  ;;  %vm188_vm0 = vmor %vm186_vm15, %vm187_vm12 }
 0x193   :  { %v210_v37 = vmul.f32 %v179_v35, %v493_v42  ;;  %v182_v23 = vmul.f32 %v297_v30, %v181_v34 }
 0x194   :  { %v203_v38 = vmul.f32 0.5, %v202_v36 }
 0x195   :  { %v217_v40 = vmul.f32 %v286_v33, %v210_v37  ;;  %v183_v41 = vmul.f32 0.5, %v182_v23 }
 0x196   :  { %v204_v43 = vsub.f32 1.5, %v203_v38 }
 0x197   :  { %v299_v44 = vpop.eup %298  ;;  %v224_v45 = vadd.f32 %v385_v39, %v217_v40  ;;  %v184_v46 = vsub.f32 1.5, %v183_v41 }
 0x198   :  { %v205_v47 = vmul.f32 %v295_v28, %v204_v43  ;;  %v191_v48 = vmul.f32 %v299_v44, %v168_v29  ;;  %vm197_vm1 = vweird.f32 %v299_v44 }
 0x199   :  { %228 = vst.msk [vmem:[%s603_s6 + $0x1] sm:$0xff] %vm125_vm3, %v224_v45  ;;  %v185_v42 = vmul.f32 %v297_v30, %v184_v46  ;;  %vm198_vm4 = vmor %vm196_vm2, %vm197_vm1 }
 0x19a   :  { %v209_v51 = vsel %vm208_vm14, %v295_v28, %v205_v47  ;;  %v192_v52 = vmul.f32 %v299_v44, %v191_v48 }
 0x19b   :  { %v213_v53 = vmul.f32 %v209_v51, %v535_v49  ;;  %v189_v54 = vsel %vm188_vm0, %v297_v30, %v185_v42 }
 0x19c   :  { %v211_v55 = vmul.f32 %v189_v54, %v537_v50  ;;  %v193_v56 = vmul.f32 0.5, %v192_v52 }
 0x19d   :  { %v220_v57 = vmul.f32 %v286_v33, %v213_v53 }
 0x19e   :  { %v218_v58 = vmul.f32 %v286_v33, %v211_v55  ;;  %v194_v59 = vsub.f32 1.5, %v193_v56 }
 0x19f   :  { %v227_v61 = vadd.f32 %v385_v39, %v220_v57 }
 0x1a0   :  { %v225_v62 = vadd.f32 %v385_v39, %v218_v58  ;;  %v195_v63 = vmul.f32 %v299_v44, %v194_v59 }
 0x1a1   :  { %231 = vst.msk [vmem:[%s603_s6 + $0x89] sm:$0xff] %vm125_vm3, %v227_v61 }
 0x1a2   :  { %229 = vst.msk [vmem:[%s603_s6 + $0x9] sm:$0xff] %vm125_vm3, %v225_v62  ;;  %v199_v49 = vsel %vm198_vm4, %v299_v44, %v195_v63 }
 0x1a3   :  { %v212_v50 = vmul.f32 %v199_v49, %v547_v60 }
 0x1a5   :  { %v219_v0 = vmul.f32 %v286_v33, %v212_v50 }
 0x1a7   :  { %v226_v1 = vadd.f32 %v385_v39, %v219_v0 }
 0x1a9   :  { %230 = vst.msk [vmem:[%s603_s6 + $0x81] sm:$0xff] %vm125_vm3, %v226_v1 }

</bundles_post_ra>
